<compile_context>
chip_gen: v6e
topology: v6e:2x2x1
jax: 0.10.0
libtpu: 0.0.40
codegen_flags: <defaults>
</compile_context>

<pallas_src>
import functools

import jax
import jax.numpy as jnp
from jax.experimental import pallas as pl
from jax.experimental.pallas import tpu as pltpu


# ----------------------------------------------------------------------------
# VMEM budget (per TPU generation)
# ----------------------------------------------------------------------------
@functools.lru_cache(maxsize=1)
def _vmem_capacity_bytes():
    try:
        info = pltpu.get_tpu_info()
        for attr in ("vmem_capacity_bytes", "vmem_bytes"):
            cap = getattr(info, attr, None)
            if cap:
                return int(cap)
    except Exception:
        pass
    return 64 * 1024 * 1024          # conservative: v7x per-TensorCore VMEM


def _budgets():
    cap = _vmem_capacity_bytes()
    vmem_limit = (3 * cap) // 4      # ~48 MiB on v7x, ~96 MiB on v5e/v6e
    block_budget = vmem_limit - (2 << 20)   # slack for compiler scratch / sems
    return vmem_limit, block_budget


# ----------------------------------------------------------------------------
# Tiling helpers
# ----------------------------------------------------------------------------
def _pick_tile(dim, align, max_tile):
    """Largest multiple of `align` dividing `dim` and <= max_tile, else dim."""
    if dim <= max_tile:
        return dim
    t = (max_tile // align) * align
    while t >= align:
        if dim % t == 0:
            return t
        t -= align
    # TODO(synk): dims > max_tile with no aligned divisor fall back to the full
    # dimension (always legal; may over-commit VMEM for pathological shapes).
    return dim


def _norm_tiles(n, L, itemsize, budget):
    """(rows, lanes) for the flattened (N, C*HW) normalize pass.

    VMEM per step ~ 2x(in block) + 2x(out block) + 2x2 (1, lanes) scale/shift
    buffers, the latter padded to 8 sublanes (32 B per lane element).
    """
    sub = 8 if itemsize >= 4 else 16
    scale_cost = 2 * 2 * 8 * 4          # scale+shift, double-buffered, padded
    per_row = 4 * L * itemsize          # in + out, double-buffered

    avail = budget - scale_cost * L
    max_rows = avail // per_row if avail > 0 else 0
    if max_rows >= n:                   # whole batch per block (small layers)
        return n, L
    if max_rows >= sub and n % sub == 0:
        nb = (max_rows // sub) * sub    # full-L rows: contiguous, lane-dense DMA
        while nb > sub and n % nb:
            nb -= sub
        return nb, L
    # Rows too large (or batch not sublane-aligned): split the lane axis.
    nb = sub if (n % sub == 0 and n > sub) else n
    per_lane = 4 * nb * itemsize + scale_cost
    lane_cap = max(128, budget // per_lane)
    return nb, _pick_tile(L, 128, lane_cap)


# ----------------------------------------------------------------------------
# Kernels
# ----------------------------------------------------------------------------
def _bn_stats_kernel(x_ref, sum_ref, sq_ref):
    """Per-channel sum / sum-of-squares over a (nb, cb, lb) clean-half block.

    Grid: (split [par], C-tiles [par], batch [arb], lane [arb]).
    sum_ref / sq_ref: (cb, 1) f32 accumulators resident across (batch, lane).
    """
    ni = pl.program_id(2)
    li = pl.program_id(3)

    x = x_ref[...].astype(jnp.float32)               # (nb, cb, lb)
    xs = jnp.sum(x, axis=0)                          # (cb, lb)  VPU adds
    xq = jnp.sum(x * x, axis=0)                      # (cb, lb)
    s = jnp.sum(xs, axis=-1, keepdims=True)          # (cb, 1)   exact-f32 XLU reduce
    q = jnp.sum(xq, axis=-1, keepdims=True)

    @pl.when((ni == 0) & (li == 0))
    def _():
        sum_ref[...] = jnp.zeros_like(sum_ref)
        sq_ref[...] = jnp.zeros_like(sq_ref)

    sum_ref[...] += s
    sq_ref[...] += q


def _bn_norm_kernel(x_ref, scale_ref, shift_ref, y_ref):
    """y = x * scale + shift over a lane-dense (nb, lb) block of (N, C*HW)."""
    y_ref[...] = (x_ref[...] * scale_ref[...] + shift_ref[...]).astype(y_ref.dtype)


# ----------------------------------------------------------------------------
# pallas_call wrappers
# ----------------------------------------------------------------------------
def _clean_half_stats(x3, bs, itemsize, vmem_limit, budget):
    """Per-channel (sum, sumsq) over the clean half x3[bs:] only."""
    n, c, hw = x3.shape
    sub = 8 if itemsize >= 4 else 16

    # Lane tile: prefer full HW (one contiguous row per channel).
    lane_cap = max(128, budget // (2 * sub * itemsize))
    lb = _pick_tile(hw, 128, lane_cap)

    # Channel tile: grow channels rather than splitting HW.
    ch_cap = max(sub, budget // (2 * lb * itemsize))
    cb = _pick_tile(c, sub, ch_cap)

    # v7x megacore: too few channel tiles to shard -> split the reduction
    # itself across a leading parallel axis (no-op on single-TC v5e/v6e).
    splits = 2 if (c // cb) <= 2 and bs >= 2 and bs % 2 == 0 else 1
    per = bs // splits

    # Samples per block: fewer grid steps, larger DMAs.
    max_nb = max(1, budget // (2 * cb * lb * itemsize))
    nb = 1
    for d in range(min(per, max_nb, 64), 0, -1):
        if per % d == 0:
            nb = d
            break

    b0 = bs // nb              # block index of the first clean sample
    pstep = per // nb

    partial = pl.pallas_call(
        _bn_stats_kernel,
        grid=(splits, c // cb, per // nb, hw // lb),
        in_specs=[pl.BlockSpec(
            (nb, cb, lb),
            lambda p, ci, ni, li: (b0 + p * pstep + ni, ci, li))],
        out_specs=(pl.BlockSpec((None, cb, 1), lambda p, ci, ni, li: (p, ci, 0)),
                   pl.BlockSpec((None, cb, 1), lambda p, ci, ni, li: (p, ci, 0))),
        out_shape=(jax.ShapeDtypeStruct((splits, c, 1), jnp.float32),
                   jax.ShapeDtypeStruct((splits, c, 1), jnp.float32)),
        compiler_params=pltpu.CompilerParams(
            dimension_semantics=("parallel", "parallel", "arbitrary", "arbitrary"),
            vmem_limit_bytes=vmem_limit),
        cost_estimate=pl.CostEstimate(
            flops=3 * bs * c * hw, transcendentals=0,
            bytes_accessed=bs * c * hw * itemsize + 2 * splits * c * 4),
    )(x3)
    return jnp.sum(partial[0], axis=0), jnp.sum(partial[1], axis=0)   # (C, 1) each


def _normalize(x2, scale_row, shift_row, nb, lb, vmem_limit):
    """y = x * scale + shift over the flattened (N, C*HW) view."""
    n, L = x2.shape
    itemsize = jnp.dtype(x2.dtype).itemsize
    return pl.pallas_call(
        _bn_norm_kernel,
        # Lane tiles OUTER so the (1, lb) scale/shift blocks stay resident
        # across the whole inner batch sweep (negligible extra HBM traffic).
        grid=(L // lb, n // nb),
        in_specs=[pl.BlockSpec((nb, lb), lambda li, ni: (ni, li)),
                  pl.BlockSpec((1, lb), lambda li, ni: (0, li)),
                  pl.BlockSpec((1, lb), lambda li, ni: (0, li))],
        out_specs=pl.BlockSpec((nb, lb), lambda li, ni: (ni, li)),
        out_shape=jax.ShapeDtypeStruct((n, L), x2.dtype),
        compiler_params=pltpu.CompilerParams(
            dimension_semantics=("parallel", "parallel"),
            vmem_limit_bytes=vmem_limit),
        cost_estimate=pl.CostEstimate(
            flops=2 * n * L, transcendentals=0,
            bytes_accessed=2 * n * L * itemsize + 8 * L),
    )(x2, scale_row, shift_row)


# ----------------------------------------------------------------------------
# Forward pass
# ----------------------------------------------------------------------------
@functools.partial(jax.jit, static_argnames=("training", "momentum", "eps"))
def cross_training_bn_clean(x, gamma, beta, running_avg_mean, running_avg_std,
                            *, training=True, momentum=0.1, eps=1e-5):
    """Forward pass of CrossTrainingBN_clean.

    Args:
      x:    (N, C, H, W) with N = 2*bs; x = concat([X_adv, X_clean], axis=0)
      gamma, beta, running_avg_mean, running_avg_std: (1, C, 1, 1)
    Returns:
      (y, new_running_avg_mean, new_running_avg_std)  [buffers unchanged in eval]
    NOTE: like the PyTorch module, `eps` is never added to the denominator, so
    a zero-std channel (e.g. the freshly-initialised running_avg_std in eval)
    produces inf/NaN exactly as the original would.
    """
    del eps
    n, c, h, w = x.shape
    hw = h * w
    L = c * hw
    itemsize = jnp.dtype(x.dtype).itemsize
    vmem_limit, budget = _budgets()

    g = gamma.reshape(c, 1).astype(jnp.float32)
    b = beta.reshape(c, 1).astype(jnp.float32)

    if training:
        bs = n // 2
        x3 = x.reshape(n, c, hw)                   # free reshape, no transpose
        sum_c, sq_c = _clean_half_stats(x3, bs, itemsize, vmem_limit, budget)
        count = bs * hw
        mean = sum_c / count                       # (C, 1)
        # unbiased variance (torch.std default, correction = 1)
        var = (sq_c - sum_c * sum_c / count) / (count - 1)
        std = jnp.sqrt(var)                        # (C, 1)
    else:
        mean = running_avg_mean.reshape(c, 1).astype(jnp.float32)
        std = running_avg_std.reshape(c, 1).astype(jnp.float32)

    scale = g / std                                # (C, 1)
    shift = b - mean * scale                       # (C, 1)

    # Pre-broadcast per-channel scale/shift to per-position rows (1, C*HW) so
    # the normalize pass is fully lane-dense regardless of HW (49, 196, ...).
    scale_row = jnp.broadcast_to(scale, (c, hw)).reshape(1, L)
    shift_row = jnp.broadcast_to(shift, (c, hw)).reshape(1, L)

    x2 = x.reshape(n, L)                           # free reshape
    nb, lb = _norm_tiles(n, L, itemsize, budget)
    y = _normalize(x2, scale_row, shift_row, nb, lb, vmem_limit).reshape(n, c, h, w)

    if training:
        bm = mean.reshape(1, c, 1, 1).astype(running_avg_mean.dtype)
        bsd = std.reshape(1, c, 1, 1).astype(running_avg_std.dtype)
        new_mean = running_avg_mean + momentum * (bm - running_avg_mean)
        new_std = running_avg_std + momentum * (bsd - running_avg_std)
        return y, new_mean, new_std
    return y, running_avg_mean, running_avg_std


# ----------------------------------------------------------------------------
# Reference (pure JAX) for correctness check
# ----------------------------------------------------------------------------
def _reference_train(x, gamma, beta, running_mean, running_std, momentum=0.1):
    bs = x.shape[0] // 2
    clean = x[bs:]
    mean = jnp.mean(clean, axis=(0, 2, 3), keepdims=True)
    var = jnp.sum((clean - mean) ** 2, axis=(0, 2, 3), keepdims=True) / (
        clean.shape[0] * clean.shape[2] * clean.shape[3] - 1)
    std = jnp.sqrt(var)
    y = (x - mean) / std
    y = y * gamma + beta
    new_mean = running_mean + momentum * (mean - running_mean)
    new_std = running_std + momentum * (std - running_std)
    return y, new_mean, new_std


def _reference_eval(x, gamma, beta, running_mean, running_std):
    y = (x - running_mean) / running_std
    return gamma * y + beta


# ----------------------------------------------------------------------------
# Main
# ----------------------------------------------------------------------------
if __name__ == "__main__":
    key = jax.random.PRNGKey(0)
    bs, C, H, W = 2, 4, 16, 16
    N = 2 * bs                                     # x = cat([X_adv, X_clean])

    x = jax.random.normal(key, (N, C, H, W), dtype=jnp.float32) * 2.0 + 0.5

    # __init__ parameter shapes / deterministic init
    gamma = jnp.ones((1, C, 1, 1), jnp.float32)
    beta = jnp.zeros((1, C, 1, 1), jnp.float32)
    running_avg_mean = jnp.ones((1, C, 1, 1), jnp.float32)
    running_avg_std = jnp.zeros((1, C, 1, 1), jnp.float32)

    # Training branch (the hot path of the module)
    y, new_mean, new_std = cross_training_bn_clean(
        x, gamma, beta, running_avg_mean, running_avg_std, training=True)
    y = jax.block_until_ready(y)

    y_ref, m_ref, s_ref = _reference_train(
        x, gamma, beta, running_avg_mean, running_avg_std)

    assert jnp.allclose(y, y_ref, atol=1e-4, rtol=1e-4)
    assert jnp.allclose(new_mean, m_ref, atol=1e-5, rtol=1e-5)
    assert jnp.allclose(new_std, s_ref, atol=1e-5, rtol=1e-5)

    # Eval branch (uses the non-degenerate updated running std)
    y_eval, _, _ = cross_training_bn_clean(
        x, gamma, beta, new_mean, new_std, training=False)
    y_eval = jax.block_until_ready(y_eval)
    y_eval_ref = _reference_eval(x, gamma, beta, new_mean, new_std)
    assert jnp.allclose(y_eval, y_eval_ref, atol=1e-4, rtol=1e-4)

    print("KERNEL_OK")
</pallas_src>

<mosaic_0001>
module attributes {stable_mosaic.version = 11 : i64} {
  func.func @_bn_stats_kernel(%arg0: i32, %arg1: i32, %arg2: i32, %arg3: i32, %arg4: memref<1x4x256xf32, #tpu.memory_space<vmem>>, %arg5: memref<1x4x1xf32, #tpu.memory_space<vmem>>, %arg6: memref<1x4x1xf32, #tpu.memory_space<vmem>>) attributes {dimension_semantics = [#tpu.dimension_semantics<parallel>, #tpu.dimension_semantics<parallel>, #tpu.dimension_semantics<arbitrary>, #tpu.dimension_semantics<arbitrary>], iteration_bounds = array<i64: 2, 1, 1, 1>, scalar_prefetch = 0 : i64, scratch_operands = 0 : i64, tpu.core_type = #tpu.core_type<tc>, window_params = [{transform_indices = @transform_0, window_bounds = array<i64: 1, 4, 256>}, {transform_indices = @transform_1, window_bounds = array<i64: 1, 4, 1>}, {transform_indices = @transform_2, window_bounds = array<i64: 1, 4, 1>}]} {
    %c0 = arith.constant 0 : index
    %c0_0 = arith.constant 0 : index
    %c0_1 = arith.constant 0 : index
    %0 = vector.load %arg4[%c0, %c0_0, %c0_1] : memref<1x4x256xf32, #tpu.memory_space<vmem>>, vector<1x4x256xf32>
    %cst = arith.constant dense<0.000000e+00> : vector<4x256xf32>
    %1 = vector.multi_reduction <add>, %0, %cst [0] : vector<1x4x256xf32> to vector<4x256xf32>
    %2 = arith.mulf %0, %0 : vector<1x4x256xf32>
    %cst_2 = arith.constant dense<0.000000e+00> : vector<4x256xf32>
    %3 = vector.multi_reduction <add>, %2, %cst_2 [0] : vector<1x4x256xf32> to vector<4x256xf32>
    %cst_3 = arith.constant dense<0.000000e+00> : vector<4xf32>
    %4 = vector.multi_reduction <add>, %1, %cst_3 [1] : vector<4x256xf32> to vector<4xf32>
    %5 = vector.shape_cast %4 : vector<4xf32> to vector<4x1xf32>
    %cst_4 = arith.constant dense<0.000000e+00> : vector<4xf32>
    %6 = vector.multi_reduction <add>, %3, %cst_4 [1] : vector<4x256xf32> to vector<4xf32>
    %7 = vector.shape_cast %6 : vector<4xf32> to vector<4x1xf32>
    %c0_i32 = arith.constant 0 : i32
    %8 = arith.cmpi eq, %arg2, %c0_i32 : i32
    %c0_i32_5 = arith.constant 0 : i32
    %9 = arith.cmpi eq, %arg3, %c0_i32_5 : i32
    %10 = arith.andi %8, %9 : i1
    %11 = arith.extui %10 : i1 to i32
    %c0_i32_6 = arith.constant 0 : i32
    %12 = arith.cmpi ne, %11, %c0_i32_6 : i32
    scf.if %12 {
      %cst_19 = arith.constant 0.000000e+00 : f32
      %25 = vector.broadcast %cst_19 : f32 to vector<4x1xf32>
      %c0_20 = arith.constant 0 : index
      %c0_21 = arith.constant 0 : index
      %c0_22 = arith.constant 0 : index
      %26 = vector.load %arg5[%c0_20, %c0_21, %c0_22] : memref<1x4x1xf32, #tpu.memory_space<vmem>>, vector<1x4x1xf32>
      %27 = vector.shape_cast %26 : vector<1x4x1xf32> to vector<4x1xf32>
      %28 = vector.shape_cast %25 : vector<4x1xf32> to vector<1x4x1xf32>
      tpu.vector_store %arg5[%c0_20, %c0_21, %c0_22], %28 {strides = array<i32>} : memref<1x4x1xf32, #tpu.memory_space<vmem>>, vector<1x4x1xf32>,
      %cst_23 = arith.constant 0.000000e+00 : f32
      %29 = vector.broadcast %cst_23 : f32 to vector<4x1xf32>
      %c0_24 = arith.constant 0 : index
      %c0_25 = arith.constant 0 : index
      %c0_26 = arith.constant 0 : index
      %30 = vector.load %arg6[%c0_24, %c0_25, %c0_26] : memref<1x4x1xf32, #tpu.memory_space<vmem>>, vector<1x4x1xf32>
      %31 = vector.shape_cast %30 : vector<1x4x1xf32> to vector<4x1xf32>
      %32 = vector.shape_cast %29 : vector<4x1xf32> to vector<1x4x1xf32>
      tpu.vector_store %arg6[%c0_24, %c0_25, %c0_26], %32 {strides = array<i32>} : memref<1x4x1xf32, #tpu.memory_space<vmem>>, vector<1x4x1xf32>,
    } else {
    }
    %c0_7 = arith.constant 0 : index
    %c0_8 = arith.constant 0 : index
    %c0_9 = arith.constant 0 : index
    %13 = vector.load %arg5[%c0_7, %c0_8, %c0_9] : memref<1x4x1xf32, #tpu.memory_space<vmem>>, vector<1x4x1xf32>
    %14 = vector.shape_cast %13 : vector<1x4x1xf32> to vector<4x1xf32>
    %15 = arith.addf %14, %5 : vector<4x1xf32>
    %c0_10 = arith.constant 0 : index
    %c0_11 = arith.constant 0 : index
    %c0_12 = arith.constant 0 : index
    %16 = vector.load %arg5[%c0_10, %c0_11, %c0_12] : memref<1x4x1xf32, #tpu.memory_space<vmem>>, vector<1x4x1xf32>
    %17 = vector.shape_cast %16 : vector<1x4x1xf32> to vector<4x1xf32>
    %18 = vector.shape_cast %15 : vector<4x1xf32> to vector<1x4x1xf32>
    tpu.vector_store %arg5[%c0_10, %c0_11, %c0_12], %18 {strides = array<i32>} : memref<1x4x1xf32, #tpu.memory_space<vmem>>, vector<1x4x1xf32>,
    %c0_13 = arith.constant 0 : index
    %c0_14 = arith.constant 0 : index
    %c0_15 = arith.constant 0 : index
    %19 = vector.load %arg6[%c0_13, %c0_14, %c0_15] : memref<1x4x1xf32, #tpu.memory_space<vmem>>, vector<1x4x1xf32>
    %20 = vector.shape_cast %19 : vector<1x4x1xf32> to vector<4x1xf32>
    %21 = arith.addf %20, %7 : vector<4x1xf32>
    %c0_16 = arith.constant 0 : index
    %c0_17 = arith.constant 0 : index
    %c0_18 = arith.constant 0 : index
    %22 = vector.load %arg6[%c0_16, %c0_17, %c0_18] : memref<1x4x1xf32, #tpu.memory_space<vmem>>, vector<1x4x1xf32>
    %23 = vector.shape_cast %22 : vector<1x4x1xf32> to vector<4x1xf32>
    %24 = vector.shape_cast %21 : vector<4x1xf32> to vector<1x4x1xf32>
    tpu.vector_store %arg6[%c0_16, %c0_17, %c0_18], %24 {strides = array<i32>} : memref<1x4x1xf32, #tpu.memory_space<vmem>>, vector<1x4x1xf32>,
    return
  }
  func.func @transform_0(%arg0: i32, %arg1: i32, %arg2: i32, %arg3: i32) -> (i32, i32, i32) {
    %c1_i32 = arith.constant 1 : i32
    %0 = arith.muli %arg0, %c1_i32 : i32
    %c2_i32 = arith.constant 2 : i32
    %1 = arith.addi %c2_i32, %0 : i32
    %2 = arith.addi %1, %arg2 : i32
    %c0_i32 = arith.constant 0 : i32
    return %2, %arg1, %arg3 : i32, i32, i32
  }
  func.func @transform_1(%arg0: i32, %arg1: i32, %arg2: i32, %arg3: i32) -> (i32, i32, i32) {
    %c0_i32 = arith.constant 0 : i32
    %c0_i32_0 = arith.constant 0 : i32
    return %arg0, %arg1, %c0_i32 : i32, i32, i32
  }
  func.func @transform_2(%arg0: i32, %arg1: i32, %arg2: i32, %arg3: i32) -> (i32, i32, i32) {
    %c0_i32 = arith.constant 0 : i32
    %c0_i32_0 = arith.constant 0 : i32
    return %arg0, %arg1, %c0_i32 : i32, i32, i32
  }
}

module attributes {stable_mosaic.version = 11 : i64} {
  func.func @_bn_norm_kernel(%arg0: i32, %arg1: i32, %arg2: memref<4x1024xf32, #tpu.memory_space<vmem>>, %arg3: memref<1x1024xf32, #tpu.memory_space<vmem>>, %arg4: memref<1x1024xf32, #tpu.memory_space<vmem>>, %arg5: memref<4x1024xf32, #tpu.memory_space<vmem>>) attributes {dimension_semantics = [#tpu.dimension_semantics<parallel>, #tpu.dimension_semantics<parallel>], iteration_bounds = array<i64: 1, 1>, scalar_prefetch = 0 : i64, scratch_operands = 0 : i64, tpu.core_type = #tpu.core_type<tc>, window_params = [{transform_indices = @transform_0, window_bounds = array<i64: 4, 1024>}, {transform_indices = @transform_1, window_bounds = array<i64: 1, 1024>}, {transform_indices = @transform_2, window_bounds = array<i64: 1, 1024>}, {transform_indices = @transform_3, window_bounds = array<i64: 4, 1024>}]} {
    %c0 = arith.constant 0 : index
    %c0_0 = arith.constant 0 : index
    %0 = vector.load %arg2[%c0, %c0_0] : memref<4x1024xf32, #tpu.memory_space<vmem>>, vector<4x1024xf32>
    %c0_1 = arith.constant 0 : index
    %c0_2 = arith.constant 0 : index
    %1 = vector.load %arg3[%c0_1, %c0_2] : memref<1x1024xf32, #tpu.memory_space<vmem>>, vector<1x1024xf32>
    %2 = vector.broadcast %1 : vector<1x1024xf32> to vector<4x1024xf32>
    %3 = arith.mulf %0, %2 : vector<4x1024xf32>
    %c0_3 = arith.constant 0 : index
    %c0_4 = arith.constant 0 : index
    %4 = vector.load %arg4[%c0_3, %c0_4] : memref<1x1024xf32, #tpu.memory_space<vmem>>, vector<1x1024xf32>
    %5 = vector.broadcast %4 : vector<1x1024xf32> to vector<4x1024xf32>
    %6 = arith.addf %3, %5 : vector<4x1024xf32>
    %c0_5 = arith.constant 0 : index
    %c0_6 = arith.constant 0 : index
    %7 = vector.load %arg5[%c0_5, %c0_6] : memref<4x1024xf32, #tpu.memory_space<vmem>>, vector<4x1024xf32>
    tpu.vector_store %arg5[%c0_5, %c0_6], %6 {strides = array<i32>} : memref<4x1024xf32, #tpu.memory_space<vmem>>, vector<4x1024xf32>,
    return
  }
  func.func @transform_0(%arg0: i32, %arg1: i32) -> (i32, i32) {
    %c0_i32 = arith.constant 0 : i32
    return %arg1, %arg0 : i32, i32
  }
  func.func @transform_1(%arg0: i32, %arg1: i32) -> (i32, i32) {
    %c0_i32 = arith.constant 0 : i32
    %c0_i32_0 = arith.constant 0 : i32
    return %c0_i32, %arg0 : i32, i32
  }
  func.func @transform_2(%arg0: i32, %arg1: i32) -> (i32, i32) {
    %c0_i32 = arith.constant 0 : i32
    %c0_i32_0 = arith.constant 0 : i32
    return %c0_i32, %arg0 : i32, i32
  }
  func.func @transform_3(%arg0: i32, %arg1: i32) -> (i32, i32) {
    %c0_i32 = arith.constant 0 : i32
    return %arg1, %arg0 : i32, i32
  }
}

</mosaic_0001>

<bundles_post_ra>
// kernel: cross_training_bn_clean.2
= control target key start
LH: loop header
LB: loop body
LE: loop exit
PB: predicated region body
PF: predicated region fallthrough
CT: control target
= control target key end

     0   :  { %s484_s9 = smov 0   ;;  %s486_s10 = smov 0   ;;  %s524_s0 = inlined_call_operand.vmem [shape: f32[4,4,256], index: 0, kind: input, shape index: {}]   ;;  %s525_s1 = inlined_call_operand.vmem [shape: f32[2,4,1], index: 1, kind: output, shape index: {0}]   ;;  %s526_s2 = inlined_call_operand.vmem [shape: f32[2,4,1], index: 2, kind: output, shape index: {1}]  }
   0x1   :  { %s488_s11 = smov 0  }
   0x2 LB: > { %s39_s12 = sadd.s32 1, %s462_s10  ;;  %p410_p0 = scmp.ge.s32.totalorder %s466_s11, 1  ;;  %s466_s11 = sphi %s488_s11, %s13_s11   ;;  %s462_s10 = sphi %s486_s10, %s528_s10   ;;  %s458_s9 = sphi %s484_s9, %s527_s9  }
   0x3   : > { %p41_p1 = scmp.ge.s32.totalorder %s39_s12, 2  ;;  %p166_p2 = scmp.lt.s32.totalorder %s466_s11, 3 }
   0x5   : > { %s530_s12 = smov (%p41_p1, %s39_s12), 0  ;;  %p167_p3 = pnand %p410_p0, %p166_p2 }
   0x6   : > { %s207_s13 = sadd.s32 (!%p167_p3), 2, %s458_s9  ;;  %p225_p4 = scmp.lt.s32.totalorder (!%p167_p3), %s458_s9, 1 }
   0x7   : > { %170 = sbr.rel (%p167_p3) target bundleno = 166 (0xa6), region = 24  ;;  %p210_p5 = scmp.lt.s32.totalorder (!%p167_p3), %s207_s13, 3 }
   0xc   : > { %s532_s9 = smov (!%p225_p4, %s458_s9), 1  ;;  %s534_s13 = smov (!%p210_p5, %s207_s13), 3  ;;  %vm266_vm0 = vcmask 3072   ;;  %vm246_vm1 = vcmask 1043456   ;;  %v468_v0 = vmov 0.0  }
   0xd   : > { %s413_s14 = sshll.u32 %s532_s9, 2  ;;  %s417_s15 = sshll.u32 %s534_s13, 3 }
   0xe   : > { %s231_s18 = scalar_lea.vmem %s525_s1, %s413_s14  ;;  %s221_s21 = scalar_lea.vmem %s524_s0, %s417_s15 }
   0xf   : > { %267 = vst.msk [vmem:[%s231_s18] sm:$0xf] %vm266_vm0, %v468_v0  ;;  %v239_v1 = vld [vmem:[%s221_s21] sm:$0xff]  ;;  %s238_s24 = scalar_lea.vmem %s526_s2, %s413_s14 }
  0x10   : > { %v244_v2 = vcombine.high %v239_v1, %v239_v1  ;;  %v247_v3 = vsel %vm246_vm1, %v239_v1, 0.0  ;;  %v241_v4 = vmul.f32 %v239_v1, %v239_v1  ;;  %268 = vst.msk [vmem:[%s238_s24] sm:$0xf] %vm266_vm0, %v468_v0 }
  0x12   : > { %v248_v5 = vsel %vm246_vm1, %v244_v2, 0.0  ;;  %v253_v6 = vcombine.high %v241_v4, %v241_v4  ;;  %v255_v7 = vsel %vm246_vm1, %v241_v4, 0.0 }
  0x13   : > { %v249_v8 = vadd.f32 %v248_v5, %v247_v3 }
  0x14   : > { %v256_v9 = vsel %vm246_vm1, %v253_v6, 0.0 }
  0x15   : > { %250 = vadd.xlane.f32.xlu0 %v249_v8  ;;  %v257_v10 = vadd.f32 %v256_v9, %v255_v7 }
  0x16   : > { %v269_v11 = vld [vmem:[%s231_s18] sm:$0xf] }
  0x17   : > { %v273_v14 = vld [vmem:[%s238_s24] sm:$0xf] }
  0x19   : > { %258 = vadd.xlane.f32.xlu0 %v257_v10 }
  0x9e   : > { %v251_v12 = vpop.xlane.xlu0 %250 }
  0x9f   : > { %v270_v13 = vadd.f32 %v269_v11, %v251_v12 }
  0xa1   : > { %272 = vst.msk [vmem:[%s231_s18] sm:$0xf] %vm266_vm0, %v270_v13 }
  0xa2   : > { %v259_v15 = vpop.xlane.xlu0 %258 }
  0xa3   : > { %v274_v16 = vadd.f32 %v273_v14, %v259_v15 }
  0xa5   : > { %275 = vst.msk [vmem:[%s238_s24] sm:$0xf] %vm266_vm0, %v274_v16 }
  0xa6 PF: > { %s13_s11 = sadd.s32 1, %s466_s11   ;;  %s527_s9 = smov %s462_s10 }
  0xa7   : > { %p10_p6 = scmp.ge.s32.totalorder %s13_s11, 4   ;;  %s528_s10 = smov %s530_s12 }
  0xa9   :  { %12 = sbr.rel (!%p10_p6) target bundleno = 2 (0x2), region = 70 }

// kernel: cross_training_bn_clean.3
= control target key start
LH: loop header
LB: loop body
LE: loop exit
PB: predicated region body
PF: predicated region fallthrough
CT: control target
= control target key end

     0   :  { %v20_v0 = vlaneseq  ;;  %s168_s1 = inlined_call_operand.vmem [shape: f32[1,1024], index: 1, kind: input, shape index: {}]   ;;  %s169_s2 = inlined_call_operand.vmem [shape: f32[1,1024], index: 2, kind: input, shape index: {}]   ;;  %s170_s0 = inlined_call_operand.vmem [shape: f32[4,1024], index: 0, kind: input, shape index: {}]   ;;  %s171_s3 = inlined_call_operand.vmem [shape: f32[4,1024], index: 3, kind: output, shape index: {}]  }
   0x1   :  { %v18_v2 = vld [vmem:[%s168_s1] sm:$0xff]  ;;  %v15_v23 = vld [vmem:[%s170_s0 + $0x8] sm:$0xff]  ;;  %v16_v28 = vld [vmem:[%s170_s0 + $0x10] sm:$0xff] }
   0x2   :  { %v21_v1 = vshrl.u32 %v20_v0, 7  ;;  %v64_v3 = vld [vmem:[%s169_s2] sm:$0xff]  ;;  %v17_v37 = vld [vmem:[%s170_s0 + $0x18] sm:$0xff] }
   0x3   :  { %v14_v16 = vld [vmem:[%s170_s0] sm:$0xff] }
   0x4   :  { %v22_v4 = vsub.s32 0, %v21_v1  ;;  %v26_v5 = vsub.s32 1, %v21_v1  ;;  %v30_v6 = vsub.s32 2, %v21_v1  ;;  %v34_v7 = vsub.s32 3, %v21_v1 }
   0x5   :  { %v38_v8 = vsub.s32 4, %v21_v1  ;;  %v42_v9 = vsub.s32 5, %v21_v1  ;;  %v46_v10 = vsub.s32 6, %v21_v1  ;;  %v50_v11 = vsub.s32 7, %v21_v1 }
   0x6   :  { %v23_v12 = vrot.slane %v18_v2, %v22_v4  ;;  %v27_v13 = vrot.slane %v18_v2, %v26_v5  ;;  %v69_v14 = vrot.slane %v64_v3, %v22_v4  ;;  %v73_v15 = vrot.slane %v64_v3, %v26_v5 }
   0x7   :  { %v31_v17 = vrot.slane %v18_v2, %v30_v6  ;;  %v35_v18 = vrot.slane %v18_v2, %v34_v7  ;;  %v77_v19 = vrot.slane %v64_v3, %v30_v6  ;;  %v81_v20 = vrot.slane %v64_v3, %v34_v7 }
   0x8   :  { %v52_v21 = vcombine.low %v23_v12, %v27_v13  ;;  %v98_v22 = vcombine.low %v69_v14, %v73_v15  ;;  %v39_v24 = vrot.slane %v18_v2, %v38_v8  ;;  %v43_v25 = vrot.slane %v18_v2, %v42_v9 }
   0x9   :  { %v53_v26 = vcombine.low %v31_v17, %v35_v18  ;;  %v99_v27 = vcombine.low %v77_v19, %v81_v20  ;;  %v85_v29 = vrot.slane %v64_v3, %v38_v8  ;;  %v89_v30 = vrot.slane %v64_v3, %v42_v9 }
   0xa   :  { %v60_v31 = vmul.f32 %v52_v21, %v14_v16  ;;  %v54_v32 = vcombine.low %v39_v24, %v43_v25  ;;  %v47_v33 = vrot.slane %v18_v2, %v46_v10  ;;  %v51_v34 = vrot.slane %v18_v2, %v50_v11 }
   0xb   :  { %v61_v35 = vmul.f32 %v53_v26, %v15_v23  ;;  %v100_v36 = vcombine.low %v85_v29, %v89_v30  ;;  %v93_v38 = vrot.slane %v64_v3, %v46_v10  ;;  %v97_v39 = vrot.slane %v64_v3, %v50_v11 }
   0xc   :  { %v106_v40 = vadd.f32 %v98_v22, %v60_v31  ;;  %v62_v41 = vmul.f32 %v54_v32, %v16_v28  ;;  %v55_v42 = vcombine.low %v47_v33, %v51_v34 }
   0xd   :  { %v107_v43 = vadd.f32 %v99_v27, %v61_v35  ;;  %v101_v44 = vcombine.low %v93_v38, %v97_v39 }
   0xe   :  { %110 = vst [vmem:[%s171_s3] sm:$0xff] %v106_v40  ;;  %v108_v45 = vadd.f32 %v100_v36, %v62_v41  ;;  %v63_v46 = vmul.f32 %v55_v42, %v17_v37 }
   0xf   :  { %111 = vst [vmem:[%s171_s3 + $0x8] sm:$0xff] %v107_v43 }
  0x10   :  { %112 = vst [vmem:[%s171_s3 + $0x10] sm:$0xff] %v108_v45  ;;  %v109_v47 = vadd.f32 %v101_v44, %v63_v46 }
  0x12   :  { %113 = vst [vmem:[%s171_s3 + $0x18] sm:$0xff] %v109_v47 }

</bundles_post_ra>
